<compile_context>
chip_gen: v6e
topology: v6e:2x2x1
jax: 0.10.0
libtpu: 0.0.40
codegen_flags: <defaults>
</compile_context>

<pallas_src>
from functools import partial

import jax
import jax.numpy as jnp
from jax.experimental import pallas as pl
from jax.experimental.pallas import tpu as pltpu

NEG_SLOPE = 0.01       # nn.LeakyReLU default
LN_EPS = 1e-5          # nn.LayerNorm default
H_REAL = 100           # module hidden width (h_dim1 == h_dim2 == 100)
H_PAD = 128            # hidden padded to one full lane width
LANE = 128
SUBLANE = 8
DEFAULT_TILE_B = 1024  # large batch tile: per-step overhead amortized, VMEM tiny


def _round_up(n, m):
    return ((n + m - 1) // m) * m


def _choose_tile_b(B):
    """Batch tile: as large as useful, but keep >=2 grid steps for v7x megacore."""
    if B <= 2 * SUBLANE:                       # tiny batch: one block
        return _round_up(B, SUBLANE)
    # Split into at least two blocks (two TensorCores on v7x), cap at DEFAULT_TILE_B.
    return min(DEFAULT_TILE_B, _round_up(pl.cdiv(B, 2), SUBLANE))


def q_nw_kernel(x_ref,
                w1_ref, b1_ref,
                w2_ref, b2_ref,
                w3_ref, b3_ref,
                o_ref):
    inv_h = jnp.float32(1.0 / H_REAL)

    def leaky_relu(h):
        return jnp.where(h >= 0, h, NEG_SLOPE * h)

    def ln_normalize(h):
        # Pre-LN activations have exactly-zero padded lanes (zero-padded weight
        # columns / bias lanes; leaky_relu(0)=0), so the 128-lane sums equal the
        # 100-real-lane sums. One-pass E[h^2]-mu^2 avoids a lane mask and a
        # second pass over h. Padded lanes of the result become -mu*rsqrt(...),
        # which is harmless: the matching rows of the next weight matrix are 0.
        mu = jnp.sum(h, axis=-1, keepdims=True) * inv_h
        ex2 = jnp.sum(h * h, axis=-1, keepdims=True) * inv_h
        var = jnp.maximum(ex2 - mu * mu, 0.0)    # guard tiny negative rounding
        return (h - mu) * jax.lax.rsqrt(var + LN_EPS)

    # x arrives f32 directly from HBM; cast to bf16 only for the MXU.
    x = x_ref[...].astype(jnp.bfloat16)                     # (TILE_B, ip_dim)

    # linear1 -> LeakyReLU -> LayerNorm (normalize only; affine folded into W2/b2)
    h = jnp.dot(x, w1_ref[...], preferred_element_type=jnp.float32) + b1_ref[...]
    h = ln_normalize(leaky_relu(h))
    # drop2: identity in eval mode

    # linear2 (ln1 affine pre-folded) -> LeakyReLU -> LayerNorm
    h = jnp.dot(h.astype(jnp.bfloat16), w2_ref[...],
                preferred_element_type=jnp.float32) + b2_ref[...]
    h = ln_normalize(leaky_relu(h))
    # drop_op: identity in eval mode

    # output projection (ln2 affine pre-folded)
    o = jnp.dot(h.astype(jnp.bfloat16), w3_ref[...],
                preferred_element_type=jnp.float32) + b3_ref[...]
    o_ref[...] = o.astype(o_ref.dtype)


def prepare_params(params):
    """One-time parameter prep (call ONCE, reuse across forwards):
    fold LN affines into the next Linear, zero-pad hidden/output feature dims
    to 128 lanes, cast matmul weights to bf16 (biases stay f32 — added
    post-accumulation). The input (K) dim of w1 is NOT padded: the kernel uses
    the full ip_dim extent directly."""
    w1, b1 = params["w1"], params["b1"]
    g1, be1 = params["g1"], params["be1"]
    w2, b2 = params["w2"], params["b2"]
    g2, be2 = params["g2"], params["be2"]
    w3, b3 = params["w3"], params["b3"]

    ip_dim = w1.shape[0]
    op_dim = w3.shape[1]
    op_pad = _round_up(op_dim, LANE)

    # y = ln_norm * g + be, then y @ W + b  ==  ln_norm @ (diag(g) W) + (be @ W + b)
    w2f = w2 * g1.reshape(H_REAL, 1)
    b2f = be1 @ w2 + b2
    w3f = w3 * g2.reshape(H_REAL, 1)
    b3f = be2 @ w3 + b3

    def pad2(a, rows, cols, dtype):
        out = jnp.zeros((rows, cols), dtype)
        return out.at[: a.shape[0], : a.shape[1]].set(a.astype(dtype))

    return {
        "w1": pad2(w1, ip_dim, H_PAD, jnp.bfloat16),
        "b1": pad2(b1, 1, H_PAD, jnp.float32),
        "w2": pad2(w2f, H_PAD, H_PAD, jnp.bfloat16),
        "b2": pad2(b2f, 1, H_PAD, jnp.float32),
        "w3": pad2(w3f, H_PAD, op_pad, jnp.bfloat16),
        "b3": pad2(b3f, 1, op_pad, jnp.float32),
    }


@partial(jax.jit, static_argnames=("op_dim",))
def q_nw_forward(x, prep, *, op_dim):
    """x: (B, ip_dim) float32. prep: output of prepare_params (arrays only)."""
    B, ip_dim = x.shape
    op_pad = prep["w3"].shape[1]

    tile_b = _choose_tile_b(B)
    grid = (pl.cdiv(B, tile_b),)          # ragged last block handled by Pallas

    # x / out are tiled over the batch grid; parameters use constant index_maps
    # so they are fetched once and stay VMEM-resident across all grid steps.
    in_specs = [
        pl.BlockSpec((tile_b, ip_dim), lambda i: (i, 0)),   # x tile (f32, full K)
        pl.BlockSpec((ip_dim, H_PAD), lambda i: (0, 0)),    # w1 (resident)
        pl.BlockSpec((1, H_PAD), lambda i: (0, 0)),         # b1
        pl.BlockSpec((H_PAD, H_PAD), lambda i: (0, 0)),     # w2
        pl.BlockSpec((1, H_PAD), lambda i: (0, 0)),         # b2
        pl.BlockSpec((H_PAD, op_pad), lambda i: (0, 0)),    # w3
        pl.BlockSpec((1, op_pad), lambda i: (0, 0)),        # b3
    ]
    out_spec = pl.BlockSpec((tile_b, op_pad), lambda i: (i, 0))

    out_padded = pl.pallas_call(
        q_nw_kernel,
        out_shape=jax.ShapeDtypeStruct((B, op_pad), jnp.float32),
        grid=grid,
        in_specs=in_specs,
        out_specs=out_spec,
        compiler_params=pltpu.CompilerParams(
            dimension_semantics=("parallel",),          # megacore-shardable
            vmem_limit_bytes=32 * 1024 * 1024,          # far above actual footprint
        ),
    )(x, prep["w1"], prep["b1"], prep["w2"], prep["b2"], prep["w3"], prep["b3"])

    return out_padded[:, :op_dim]


def init_params(key, ip_dim, op_dim, h=H_REAL):
    """Synthetic parameters with the shapes q_nw.__init__ implies.
    LN affines are non-trivial so the affine-folding path is exercised."""
    ks = jax.random.split(key, 10)
    s1 = 1.0 / jnp.sqrt(ip_dim)
    s2 = 1.0 / jnp.sqrt(h)
    s3 = 1.0 / jnp.sqrt(h)
    return {
        # Linear weights stored as (in, out) == PyTorch weight.T
        "w1": jax.random.uniform(ks[0], (ip_dim, h), jnp.float32, -s1, s1),
        "b1": jax.random.uniform(ks[1], (1, h), jnp.float32, -s1, s1),
        "g1": 1.0 + 0.1 * jax.random.normal(ks[2], (1, h), jnp.float32),
        "be1": 0.1 * jax.random.normal(ks[3], (1, h), jnp.float32),
        "w2": jax.random.uniform(ks[4], (h, h), jnp.float32, -s2, s2),
        "b2": jax.random.uniform(ks[5], (1, h), jnp.float32, -s2, s2),
        "g2": 1.0 + 0.1 * jax.random.normal(ks[6], (1, h), jnp.float32),
        "be2": 0.1 * jax.random.normal(ks[7], (1, h), jnp.float32),
        "w3": jax.random.uniform(ks[8], (h, op_dim), jnp.float32, -s3, s3),
        "b3": jax.random.uniform(ks[9], (1, op_dim), jnp.float32, -s3, s3),
    }


def q_nw_reference(x, p):
    """Pure-JAX f32 reference of the PyTorch eval-mode forward."""
    def ln(h, g, b):
        mu = jnp.mean(h, -1, keepdims=True)
        var = jnp.mean((h - mu) ** 2, -1, keepdims=True)
        return (h - mu) / jnp.sqrt(var + LN_EPS) * g + b

    h = x @ p["w1"] + p["b1"]
    h = jnp.where(h >= 0, h, NEG_SLOPE * h)
    h = ln(h, p["g1"], p["be1"])
    h = h @ p["w2"] + p["b2"]
    h = jnp.where(h >= 0, h, NEG_SLOPE * h)
    h = ln(h, p["g2"], p["be2"])
    return h @ p["w3"] + p["b3"]


if __name__ == "__main__":
    B, IP_DIM, OP_DIM = 8, 32, 16

    key = jax.random.PRNGKey(0)
    k_x, k_p = jax.random.split(key)
    x = jax.random.normal(k_x, (B, IP_DIM), jnp.float32)
    params = init_params(k_p, IP_DIM, OP_DIM)

    # One-time parameter prep (hoisted out of the per-call path).
    prep = jax.tree_util.tree_map(jax.block_until_ready, prepare_params(params))

    out = jax.block_until_ready(q_nw_forward(x, prep, op_dim=OP_DIM))
    ref = q_nw_reference(x, params)

    assert out.shape == (B, OP_DIM)
    # bf16 matmul operands (f32 accumulation) -> loose tolerance vs f32 reference.
    max_err = float(jnp.max(jnp.abs(out - ref)))
    assert jnp.allclose(out, ref, atol=5e-2, rtol=5e-2), (
        f"mismatch vs reference (max abs err {max_err})")

    print("KERNEL_OK")
</pallas_src>

<mosaic_0001>
module attributes {stable_mosaic.version = 11 : i64} {
  func.func @q_nw_kernel(%arg0: i32, %arg1: memref<8x32xf32, #tpu.memory_space<vmem>>, %arg2: memref<32x128xbf16, #tpu.memory_space<vmem>>, %arg3: memref<1x128xf32, #tpu.memory_space<vmem>>, %arg4: memref<128x128xbf16, #tpu.memory_space<vmem>>, %arg5: memref<1x128xf32, #tpu.memory_space<vmem>>, %arg6: memref<128x128xbf16, #tpu.memory_space<vmem>>, %arg7: memref<1x128xf32, #tpu.memory_space<vmem>>, %arg8: memref<8x128xf32, #tpu.memory_space<vmem>>) attributes {dimension_semantics = [#tpu.dimension_semantics<parallel>], iteration_bounds = array<i64: 1>, scalar_prefetch = 0 : i64, scratch_operands = 0 : i64, tpu.core_type = #tpu.core_type<tc>, window_params = [{transform_indices = @transform_0, window_bounds = array<i64: 8, 32>}, {pipeline_mode = #tpu.pipeline_mode<synchronous>, transform_indices = @transform_1, window_bounds = array<i64: 32, 128>}, {pipeline_mode = #tpu.pipeline_mode<synchronous>, transform_indices = @transform_2, window_bounds = array<i64: 1, 128>}, {pipeline_mode = #tpu.pipeline_mode<synchronous>, transform_indices = @transform_3, window_bounds = array<i64: 128, 128>}, {pipeline_mode = #tpu.pipeline_mode<synchronous>, transform_indices = @transform_4, window_bounds = array<i64: 1, 128>}, {pipeline_mode = #tpu.pipeline_mode<synchronous>, transform_indices = @transform_5, window_bounds = array<i64: 128, 128>}, {pipeline_mode = #tpu.pipeline_mode<synchronous>, transform_indices = @transform_6, window_bounds = array<i64: 1, 128>}, {transform_indices = @transform_7, window_bounds = array<i64: 8, 128>}]} {
    %c0 = arith.constant 0 : index
    %c0_0 = arith.constant 0 : index
    %0 = vector.load %arg1[%c0, %c0_0] : memref<8x32xf32, #tpu.memory_space<vmem>>, vector<8x32xf32>
    %1 = arith.truncf %0 : vector<8x32xf32> to vector<8x32xbf16>
    %c0_1 = arith.constant 0 : index
    %c0_2 = arith.constant 0 : index
    %2 = vector.load %arg2[%c0_1, %c0_2] : memref<32x128xbf16, #tpu.memory_space<vmem>>, vector<32x128xbf16>
    %cst = arith.constant dense<0.000000e+00> : vector<8x128xf32>
    %3 = tpu.matmul %1, %2, %cst {dimension_numbers = #tpu.dot_dimension_numbers<[1], [0], [0], [1], [0, 0, 1, 1], [], []>} : vector<8x32xbf16>, vector<32x128xbf16>, vector<8x128xf32> -> vector<8x128xf32>
    %c0_3 = arith.constant 0 : index
    %c0_4 = arith.constant 0 : index
    %4 = vector.load %arg3[%c0_3, %c0_4] : memref<1x128xf32, #tpu.memory_space<vmem>>, vector<1x128xf32>
    %5 = vector.broadcast %4 : vector<1x128xf32> to vector<8x128xf32>
    %6 = arith.addf %3, %5 : vector<8x128xf32>
    %cst_5 = arith.constant 0.000000e+00 : f32
    %7 = vector.broadcast %cst_5 : f32 to vector<8x128xf32>
    %8 = arith.cmpf oge, %6, %7 : vector<8x128xf32>
    %cst_6 = arith.constant 0.00999999977 : f32
    %9 = vector.broadcast %cst_6 : f32 to vector<8x128xf32>
    %10 = arith.mulf %9, %6 : vector<8x128xf32>
    %11 = arith.select %8, %6, %10 : vector<8x128xi1>, vector<8x128xf32>
    %cst_7 = arith.constant dense<0.000000e+00> : vector<8xf32>
    %12 = vector.multi_reduction <add>, %11, %cst_7 [1] : vector<8x128xf32> to vector<8xf32>
    %13 = vector.shape_cast %12 : vector<8xf32> to vector<8x1xf32>
    %cst_8 = arith.constant 0.00999999977 : f32
    %14 = vector.broadcast %cst_8 : f32 to vector<8x1xf32>
    %15 = arith.mulf %13, %14 : vector<8x1xf32>
    %16 = arith.mulf %11, %11 : vector<8x128xf32>
    %cst_9 = arith.constant dense<0.000000e+00> : vector<8xf32>
    %17 = vector.multi_reduction <add>, %16, %cst_9 [1] : vector<8x128xf32> to vector<8xf32>
    %18 = vector.shape_cast %17 : vector<8xf32> to vector<8x1xf32>
    %cst_10 = arith.constant 0.00999999977 : f32
    %19 = vector.broadcast %cst_10 : f32 to vector<8x1xf32>
    %20 = arith.mulf %18, %19 : vector<8x1xf32>
    %21 = arith.mulf %15, %15 : vector<8x1xf32>
    %22 = arith.subf %20, %21 : vector<8x1xf32>
    %cst_11 = arith.constant 0.000000e+00 : f32
    %23 = vector.broadcast %cst_11 : f32 to vector<8x1xf32>
    %24 = arith.maximumf %22, %23 : vector<8x1xf32>
    %25 = vector.broadcast %15 : vector<8x1xf32> to vector<8x128xf32>
    %26 = arith.subf %11, %25 : vector<8x128xf32>
    %cst_12 = arith.constant 9.99999974E-6 : f32
    %27 = vector.broadcast %cst_12 : f32 to vector<8x1xf32>
    %28 = arith.addf %24, %27 : vector<8x1xf32>
    %29 = math.rsqrt %28 : vector<8x1xf32>
    %30 = vector.broadcast %29 : vector<8x1xf32> to vector<8x128xf32>
    %31 = arith.mulf %26, %30 : vector<8x128xf32>
    %32 = arith.truncf %31 : vector<8x128xf32> to vector<8x128xbf16>
    %c0_13 = arith.constant 0 : index
    %c0_14 = arith.constant 0 : index
    %33 = vector.load %arg4[%c0_13, %c0_14] : memref<128x128xbf16, #tpu.memory_space<vmem>>, vector<128x128xbf16>
    %cst_15 = arith.constant dense<0.000000e+00> : vector<8x128xf32>
    %34 = tpu.matmul %32, %33, %cst_15 {dimension_numbers = #tpu.dot_dimension_numbers<[1], [0], [0], [1], [0, 0, 1, 1], [], []>} : vector<8x128xbf16>, vector<128x128xbf16>, vector<8x128xf32> -> vector<8x128xf32>
    %c0_16 = arith.constant 0 : index
    %c0_17 = arith.constant 0 : index
    %35 = vector.load %arg5[%c0_16, %c0_17] : memref<1x128xf32, #tpu.memory_space<vmem>>, vector<1x128xf32>
    %36 = vector.broadcast %35 : vector<1x128xf32> to vector<8x128xf32>
    %37 = arith.addf %34, %36 : vector<8x128xf32>
    %cst_18 = arith.constant 0.000000e+00 : f32
    %38 = vector.broadcast %cst_18 : f32 to vector<8x128xf32>
    %39 = arith.cmpf oge, %37, %38 : vector<8x128xf32>
    %cst_19 = arith.constant 0.00999999977 : f32
    %40 = vector.broadcast %cst_19 : f32 to vector<8x128xf32>
    %41 = arith.mulf %40, %37 : vector<8x128xf32>
    %42 = arith.select %39, %37, %41 : vector<8x128xi1>, vector<8x128xf32>
    %cst_20 = arith.constant dense<0.000000e+00> : vector<8xf32>
    %43 = vector.multi_reduction <add>, %42, %cst_20 [1] : vector<8x128xf32> to vector<8xf32>
    %44 = vector.shape_cast %43 : vector<8xf32> to vector<8x1xf32>
    %cst_21 = arith.constant 0.00999999977 : f32
    %45 = vector.broadcast %cst_21 : f32 to vector<8x1xf32>
    %46 = arith.mulf %44, %45 : vector<8x1xf32>
    %47 = arith.mulf %42, %42 : vector<8x128xf32>
    %cst_22 = arith.constant dense<0.000000e+00> : vector<8xf32>
    %48 = vector.multi_reduction <add>, %47, %cst_22 [1] : vector<8x128xf32> to vector<8xf32>
    %49 = vector.shape_cast %48 : vector<8xf32> to vector<8x1xf32>
    %cst_23 = arith.constant 0.00999999977 : f32
    %50 = vector.broadcast %cst_23 : f32 to vector<8x1xf32>
    %51 = arith.mulf %49, %50 : vector<8x1xf32>
    %52 = arith.mulf %46, %46 : vector<8x1xf32>
    %53 = arith.subf %51, %52 : vector<8x1xf32>
    %cst_24 = arith.constant 0.000000e+00 : f32
    %54 = vector.broadcast %cst_24 : f32 to vector<8x1xf32>
    %55 = arith.maximumf %53, %54 : vector<8x1xf32>
    %56 = vector.broadcast %46 : vector<8x1xf32> to vector<8x128xf32>
    %57 = arith.subf %42, %56 : vector<8x128xf32>
    %cst_25 = arith.constant 9.99999974E-6 : f32
    %58 = vector.broadcast %cst_25 : f32 to vector<8x1xf32>
    %59 = arith.addf %55, %58 : vector<8x1xf32>
    %60 = math.rsqrt %59 : vector<8x1xf32>
    %61 = vector.broadcast %60 : vector<8x1xf32> to vector<8x128xf32>
    %62 = arith.mulf %57, %61 : vector<8x128xf32>
    %63 = arith.truncf %62 : vector<8x128xf32> to vector<8x128xbf16>
    %c0_26 = arith.constant 0 : index
    %c0_27 = arith.constant 0 : index
    %64 = vector.load %arg6[%c0_26, %c0_27] : memref<128x128xbf16, #tpu.memory_space<vmem>>, vector<128x128xbf16>
    %cst_28 = arith.constant dense<0.000000e+00> : vector<8x128xf32>
    %65 = tpu.matmul %63, %64, %cst_28 {dimension_numbers = #tpu.dot_dimension_numbers<[1], [0], [0], [1], [0, 0, 1, 1], [], []>} : vector<8x128xbf16>, vector<128x128xbf16>, vector<8x128xf32> -> vector<8x128xf32>
    %c0_29 = arith.constant 0 : index
    %c0_30 = arith.constant 0 : index
    %66 = vector.load %arg7[%c0_29, %c0_30] : memref<1x128xf32, #tpu.memory_space<vmem>>, vector<1x128xf32>
    %67 = vector.broadcast %66 : vector<1x128xf32> to vector<8x128xf32>
    %68 = arith.addf %65, %67 : vector<8x128xf32>
    %c0_31 = arith.constant 0 : index
    %c0_32 = arith.constant 0 : index
    %69 = vector.load %arg8[%c0_31, %c0_32] : memref<8x128xf32, #tpu.memory_space<vmem>>, vector<8x128xf32>
    tpu.vector_store %arg8[%c0_31, %c0_32], %68 {strides = array<i32>} : memref<8x128xf32, #tpu.memory_space<vmem>>, vector<8x128xf32>,
    return
  }
  func.func @transform_0(%arg0: i32) -> (i32, i32) {
    %c0_i32 = arith.constant 0 : i32
    %c0_i32_0 = arith.constant 0 : i32
    return %arg0, %c0_i32 : i32, i32
  }
  func.func @transform_1(%arg0: i32) -> (i32, i32) {
    %c0_i32 = arith.constant 0 : i32
    %c0_i32_0 = arith.constant 0 : i32
    %c0_i32_1 = arith.constant 0 : i32
    return %c0_i32, %c0_i32_0 : i32, i32
  }
  func.func @transform_2(%arg0: i32) -> (i32, i32) {
    %c0_i32 = arith.constant 0 : i32
    %c0_i32_0 = arith.constant 0 : i32
    %c0_i32_1 = arith.constant 0 : i32
    return %c0_i32, %c0_i32_0 : i32, i32
  }
  func.func @transform_3(%arg0: i32) -> (i32, i32) {
    %c0_i32 = arith.constant 0 : i32
    %c0_i32_0 = arith.constant 0 : i32
    %c0_i32_1 = arith.constant 0 : i32
    return %c0_i32, %c0_i32_0 : i32, i32
  }
  func.func @transform_4(%arg0: i32) -> (i32, i32) {
    %c0_i32 = arith.constant 0 : i32
    %c0_i32_0 = arith.constant 0 : i32
    %c0_i32_1 = arith.constant 0 : i32
    return %c0_i32, %c0_i32_0 : i32, i32
  }
  func.func @transform_5(%arg0: i32) -> (i32, i32) {
    %c0_i32 = arith.constant 0 : i32
    %c0_i32_0 = arith.constant 0 : i32
    %c0_i32_1 = arith.constant 0 : i32
    return %c0_i32, %c0_i32_0 : i32, i32
  }
  func.func @transform_6(%arg0: i32) -> (i32, i32) {
    %c0_i32 = arith.constant 0 : i32
    %c0_i32_0 = arith.constant 0 : i32
    %c0_i32_1 = arith.constant 0 : i32
    return %c0_i32, %c0_i32_0 : i32, i32
  }
  func.func @transform_7(%arg0: i32) -> (i32, i32) {
    %c0_i32 = arith.constant 0 : i32
    %c0_i32_0 = arith.constant 0 : i32
    return %arg0, %c0_i32 : i32, i32
  }
}

</mosaic_0001>

<bundles_post_ra>
// kernel: q_nw_forward.1
= control target key start
LH: loop header
LB: loop body
LE: loop exit
PB: predicated region body
PF: predicated region fallthrough
CT: control target
= control target key end

     0   :  { %12 = vsyncpa [#allocation3], 0  ;;  %s759_s0 = inlined_call_operand.hbm [shape: f32[8,32], index: 0, kind: input, shape index: {}]   ;;  %s760_s1 = inlined_call_operand.hbm [shape: bf16[32,128], index: 1, kind: input, shape index: {}]   ;;  %s761_s2 = inlined_call_operand.vmem [shape: f32[1,128], index: 2, kind: input, shape index: {}]   ;;  %s762_s3 = inlined_call_operand.hbm [shape: bf16[128,128], index: 3, kind: input, shape index: {}]   ;;  %s763_s4 = inlined_call_operand.vmem [shape: f32[1,128], index: 4, kind: input, shape index: {}]   ;;  %s764_s5 = inlined_call_operand.hbm [shape: bf16[128,128], index: 5, kind: input, shape index: {}]   ;;  %s765_s6 = inlined_call_operand.vmem [shape: f32[1,128], index: 6, kind: input, shape index: {}]   ;;  %s766_s7 = inlined_call_operand.hbm [shape: f32[8,128], index: 7, kind: output, shape index: {}]  }
   0x1   :  { %13 = vsyncpa [#allocation6], 0 }
   0x2   :  { %14 = vsyncpa [#allocation9], 0 }
   0x3   :  { %15 = vsyncpa [#allocation4], 0  ;;  %s656_s24 = smov [#allocation5]  }
   0x4   :  { %s31_s25 = sshll.u32 %s656_s24, 4  ;;  %s32_s25 = int_to_ptr.vmem [resolvable:$true] %s31_s25 }
   0x5   :  { %s556_s26 = scalar_lea.vmem %s32_s25, 256  ;;  %p561_p1 = scmp.lt.s32.totalorder %s32_s25, %s32_s25 }
   0x6   :  { %p557_p0 = scmp.ne.s32.totalorder %s32_s25, %s556_s26  ;;  %p562_p2 = scmp.lt.s32.totalorder %s556_s26, %s556_s26 }
   0x8   :  { %p563_p3 = por %p562_p2, %p561_p1 }
   0xa   :  { %p564_p4 = pnand %p563_p3, %p557_p0 }
   0xc   :  { %567 = shalt.err (!%p564_p4)
}
   0xd   :  { %s657_s27 = smov 64   ;;  %s658_s28 = smov 4  }
   0xe   :  { %37 = dma.hbm_to_vmem [thread:$0]  %s760_s1, 256, %s32_s25, [#allocation6], %s657_s27, %s657_s27, %s658_s28  }
   0xf   :  { %s659_s8 = smov [#allocation2]   ;;  %s660_s10 = smov [#allocation7]  }
  0x10   :  { %s22_s9 = sshll.u32 %s659_s8, 4  ;;  %s45_s11 = sshll.u32 %s660_s10, 4  ;;  %s23_s9 = int_to_ptr.vmem [resolvable:$true] %s22_s9  ;;  %s46_s11 = int_to_ptr.vmem [resolvable:$true] %s45_s11 }
  0x11   :  { %s576_s12 = scalar_lea.vmem %s23_s9, 128  ;;  %p581_p6 = scmp.lt.s32.totalorder %s23_s9, %s23_s9 }
  0x12   :  { %p577_p5 = scmp.ne.s32.totalorder %s23_s9, %s576_s12  ;;  %p582_p7 = scmp.lt.s32.totalorder %s576_s12, %s576_s12 }
  0x14   :  { %p583_p8 = por %p582_p7, %p581_p6 }
  0x16   :  { %p584_p9 = pnand %p583_p8, %p577_p5 }
  0x18   :  { %587 = shalt.err (!%p584_p9)
}
  0x19   :  { %25 = dma.hbm_to_vmem [thread:$0]  %s759_s0, 128, %s23_s9, [#allocation3]  }
  0x1a   :  { %s596_s15 = scalar_lea.vmem %s46_s11, 1024  ;;  %p601_p11 = scmp.lt.s32.totalorder %s46_s11, %s46_s11 }
  0x1b   :  { %p597_p10 = scmp.ne.s32.totalorder %s46_s11, %s596_s15  ;;  %p602_p12 = scmp.lt.s32.totalorder %s596_s15, %s596_s15 }
  0x1d   :  { %p603_p13 = por %p602_p12, %p601_p11 }
  0x1f   :  { %p604_p0 = pnand %p603_p13, %p597_p10 }
  0x21   :  { %607 = shalt.err (!%p604_p0)
}
  0x22   :  { %51 = dma.hbm_to_vmem [thread:$0]  %s762_s3, 1024, %s46_s11, [#allocation6], %s657_s27, %s657_s27, %s658_s28  }
  0x23   :  { %s661_s17 = smov [#allocation8]  }
  0x24   :  { %s59_s18 = sshll.u32 %s661_s17, 4  ;;  %s60_s18 = int_to_ptr.vmem [resolvable:$true] %s59_s18 }
  0x25   :  { %s616_s19 = scalar_lea.vmem %s60_s18, 1024  ;;  %p621_p2 = scmp.lt.s32.totalorder %s60_s18, %s60_s18 }
  0x26   :  { %p617_p1 = scmp.ne.s32.totalorder %s60_s18, %s616_s19  ;;  %p622_p3 = scmp.lt.s32.totalorder %s616_s19, %s616_s19 }
  0x28   :  { %p623_p4 = por %p622_p3, %p621_p2 }
  0x2a   :  { %p624_p5 = pnand %p623_p4, %p617_p1 }
  0x2c   :  { %627 = shalt.err (!%p624_p5)
}
  0x2d   :  { %65 = dma.hbm_to_vmem [thread:$0]  %s764_s5, 1024, %s60_s18, [#allocation9], %s657_s27, %s657_s27, %s658_s28  }
  0x2e   :  { %648 = dma.done.wait [#allocation3], 128  }
  0x2f   :  { %649 = vsyncadd [#allocation3], 4294967168 }
  0x30   :  { %650 = dma.done.wait [#allocation6], 1280  }
  0x31   :  { %651 = vsyncadd [#allocation6], 4294966016 }
  0x32   :  { %652 = dma.done.wait [#allocation9], 1024  }
  0x33   :  { %653 = vsyncadd [#allocation9], 4294966272  ;;  %v662_v0 = vmov 0.0   ;;  %vm663_vm0 = vmmov 0   ;;  %v526_v1 = vld [vmem:[#allocation5 + $0x8] sm:$0xff]   ;;  %v527_v2 = vld [vmem:[#allocation5] sm:$0xff]  }
  0x34   :  { %469 = vmatprep.subr.bf16.mxu0 %v662_v0  ;;  %473 = vmatprep.mubr.msk.bf16.mxu0 %vm663_vm0, %v662_v0  ;;  %v81_v3 = vld [vmem:[#allocation2] sm:$0xff]  ;;  %vm106_vm1 = vcmask 261120   ;;  %v528_v5 = vld [vmem:[#allocation7 + $0x38] sm:$0xff]   ;;  %v529_v15 = vld [vmem:[#allocation7 + $0x30] sm:$0xff]   ;;  %s664_s23 = smov [#allocation10]  }
  0x35   :  { %477 = vmatprep.subr.bf16.mxu1 %v662_v0  ;;  %493 = vmatprep.mubr.msk.bf16.mxu1 %vm663_vm0, %v662_v0  ;;  %v82_v4 = vpack.c.bf16 %v81_v3, %v81_v3  ;;  %v426_v6 = vld [vmem:[%s761_s2] ss:$0 sm:$0xff]  ;;  %v531_v17 = vld [vmem:[#allocation7 + $0x20] sm:$0xff]   ;;  %v532_v18 = vld [vmem:[#allocation7 + $0x18] sm:$0xff]   ;;  %s415_s24 = sshll.u32 %s664_s23, 4  ;;  %s416_s24 = int_to_ptr.vmem [resolvable:$true] %s415_s24 }
  0x36   :  { %470 = vmatpush3.bf16.msra.mxu0 %v526_v1  ;;  %478 = vmatpush3.bf16.msra.mxu1 %v528_v5  ;;  %v530_v16 = vld [vmem:[#allocation7 + $0x28] sm:$0xff]   ;;  %v533_v19 = vld [vmem:[#allocation7 + $0x10] sm:$0xff]   ;;  %v535_v21 = vld [vmem:[#allocation7] sm:$0xff]   ;;  %s628_s25 = scalar_lea.vmem %s416_s24, 128  ;;  %p633_p7 = scmp.lt.s32.totalorder %s416_s24, %s416_s24 }
  0x37   :  { %471 = vmatprep.subr.bf16.mxu0 %v662_v0  ;;  %479 = vmatprep.subr.bf16.mxu1 %v662_v0  ;;  %v534_v20 = vld [vmem:[#allocation7 + $0x8] sm:$0xff]   ;;  %v536_v34 = vld [vmem:[#allocation8 + $0x38] sm:$0xff]   ;;  %v537_v44 = vld [vmem:[#allocation8 + $0x30] sm:$0xff]   ;;  %p629_p6 = scmp.ne.s32.totalorder %s416_s24, %s628_s25  ;;  %p634_p8 = scmp.lt.s32.totalorder %s628_s25, %s628_s25 }
  0x38   :  { %v430_v35 = vld [vmem:[%s763_s4] ss:$0 sm:$0xff]  ;;  %v539_v46 = vld [vmem:[#allocation8 + $0x20] sm:$0xff]   ;;  %v540_v47 = vld [vmem:[#allocation8 + $0x18] sm:$0xff]  }
  0x39   :  { %v538_v45 = vld [vmem:[#allocation8 + $0x28] sm:$0xff]   ;;  %v541_v48 = vld [vmem:[#allocation8 + $0x10] sm:$0xff]   ;;  %v543_v50 = vld [vmem:[#allocation8] sm:$0xff]   ;;  %p635_p9 = por %p634_p8, %p633_p7 }
  0x3a   :  { %472 = vmatpush3.bf16.msra.mxu0 %v527_v2  ;;  %480 = vmatpush3.bf16.msra.mxu1 %v529_v15  ;;  %v542_v49 = vld [vmem:[#allocation8 + $0x8] sm:$0xff]  }
  0x3b   :  { %497 = vmatprep.subr.bf16.mxu0 %v662_v0  ;;  %481 = vmatprep.subr.bf16.mxu1 %v662_v0  ;;  %v439_v63 = vld [vmem:[%s765_s6] ss:$0 sm:$0xff]  ;;  %p636_p10 = pnand %p635_p9, %p629_p6 }
  0x3d   :  { %474 = vmatmul.mubr.msk.bf16.vlgmr.msra.gmra.mxu0 %vm106_vm1, %v82_v4 }
  0x3e   :  { %513 = vmatprep.mubr.msk.bf16.mxu0 %vm663_vm0, %v662_v0  ;;  %482 = vmatpush3.bf16.msra.mxu1 %v530_v16 }
  0x3f   :  { %483 = vmatprep.subr.bf16.mxu1 %v662_v0  ;;  %498 = vmatpush3.bf16.msra.mxu0 %v536_v34 }
  0x40   :  { %499 = vmatprep.subr.bf16.mxu0 %v662_v0 }
  0x42   :  { %484 = vmatpush3.bf16.msra.mxu1 %v531_v17 }
  0x43   :  { %485 = vmatprep.subr.bf16.mxu1 %v662_v0  ;;  %500 = vmatpush3.bf16.msra.mxu0 %v537_v44 }
  0x44   :  { %501 = vmatprep.subr.bf16.mxu0 %v662_v0 }
  0x46   :  { %486 = vmatpush3.bf16.msra.mxu1 %v532_v18 }
  0x47   :  { %487 = vmatprep.subr.bf16.mxu1 %v662_v0  ;;  %502 = vmatpush3.bf16.msra.mxu0 %v538_v45 }
  0x48   :  { %503 = vmatprep.subr.bf16.mxu0 %v662_v0 }
  0x4a   :  { %488 = vmatpush3.bf16.msra.mxu1 %v533_v19 }
  0x4b   :  { %489 = vmatprep.subr.bf16.mxu1 %v662_v0  ;;  %504 = vmatpush3.bf16.msra.mxu0 %v539_v46 }
  0x4c   :  { %505 = vmatprep.subr.bf16.mxu0 %v662_v0 }
  0x4e   :  { %490 = vmatpush3.bf16.msra.mxu1 %v534_v20 }
  0x4f   :  { %491 = vmatprep.subr.bf16.mxu1 %v662_v0  ;;  %506 = vmatpush3.bf16.msra.mxu0 %v540_v47 }
  0x50   :  { %507 = vmatprep.subr.bf16.mxu0 %v662_v0 }
  0x52   :  { %492 = vmatpush3.bf16.msra.mxu1 %v535_v21 }
  0x53   :  { %508 = vmatpush3.bf16.msra.mxu0 %v541_v48 }
  0x54   :  { %509 = vmatprep.subr.bf16.mxu0 %v662_v0 }
  0x57   :  { %510 = vmatpush3.bf16.msra.mxu0 %v542_v49 }
  0x58   :  { %511 = vmatprep.subr.bf16.mxu0 %v662_v0 }
  0x5b   :  { %512 = vmatpush3.bf16.msra.mxu0 %v543_v50 }
  0xfd   :  { %v144_v7 = vpop.f32.mrf.mxu0 }
  0xfe   :  { %v145_v8 = vadd.f32 %v426_v6, %v144_v7 }
  0xff   :  { %v475_v9 = vpop.f32.mrf.mxu0 }
 0x100   :  { %v151_v10 = vmul.f32 0.01, %v145_v8  ;;  %vm150_vm2 = vcmp.ge.f32.partialorder %v145_v8, 0.0 }
 0x101   :  { %v147_v11 = vpop.f32.mrf.mxu0 }
 0x102   :  { %v152_v12 = vsel %vm150_vm2, %v145_v8, %v151_v10 }
 0x103   :  { %153 = vadd.xlane.f32.xlu0 %v152_v12  ;;  %v476_v13 = vpop.f32.mrf.mxu0  ;;  %v156_v14 = vmul.f32 %v152_v12, %v152_v12 }
 0x107   :  { %157 = vadd.xlane.f32.xlu0 %v156_v14 }
 0x18c   :  { %v154_v22 = vpop.xlane.xlu0 %153 }
 0x18d   :  { %v155_v23 = vmul.f32 0.01, %v154_v22 }
 0x18f   :  { %v160_v25 = vmul.f32 %v155_v23, %v155_v23  ;;  %v163_v30 = vsub.f32 %v152_v12, %v155_v23 }
 0x190   :  { %v158_v24 = vpop.xlane.xlu0 %157 }
 0x191   :  { %v159_v26 = vmul.f32 0.01, %v158_v24 }
 0x193   :  { %v161_v27 = vsub.f32 %v159_v26, %v160_v25 }
 0x195   :  { %v162_v28 = vmax.f32 %v161_v27, 0.0 }
 0x197   :  { %v164_v29 = vadd.f32 1e-05, %v162_v28 }
 0x199   :  { %544 = vrsqrt.f32 %v164_v29 }
 0x1a6   :  { %v545_v31 = vpop.eup %544 }
 0x1a7   :  { %v166_v32 = vmul.f32 %v545_v31, %v163_v30 }
 0x1a9   :  { %v167_v33 = vpack.c.bf16 %v166_v32, %v166_v32 }
 0x1ab   :  { %494 = vmatmul.mubr.bf16.vlgmr.msra.gmra.mxu1 %v167_v33 }
 0x26b   :  { %v273_v36 = vpop.f32.mrf.mxu1 }
 0x26c   :  { %v274_v37 = vadd.f32 %v430_v35, %v273_v36 }
 0x26d   :  { %v495_v38 = vpop.f32.mrf.mxu1 }
 0x26e   :  { %v280_v39 = vmul.f32 0.01, %v274_v37  ;;  %vm279_vm3 = vcmp.ge.f32.partialorder %v274_v37, 0.0 }
 0x26f   :  { %v276_v40 = vpop.f32.mrf.mxu1 }
 0x270   :  { %v281_v41 = vsel %vm279_vm3, %v274_v37, %v280_v39 }
 0x271   :  { %282 = vadd.xlane.f32.xlu1 %v281_v41  ;;  %v496_v42 = vpop.f32.mrf.mxu1  ;;  %v285_v43 = vmul.f32 %v281_v41, %v281_v41 }
 0x275   :  { %286 = vadd.xlane.f32.xlu1 %v285_v43 }
 0x2fa   :  { %v283_v51 = vpop.xlane.xlu1 %282 }
 0x2fb   :  { %v284_v52 = vmul.f32 0.01, %v283_v51 }
 0x2fd   :  { %v289_v54 = vmul.f32 %v284_v52, %v284_v52  ;;  %v292_v59 = vsub.f32 %v281_v41, %v284_v52 }
 0x2fe   :  { %v287_v53 = vpop.xlane.xlu1 %286 }
 0x2ff   :  { %v288_v55 = vmul.f32 0.01, %v287_v53 }
 0x301   :  { %v290_v56 = vsub.f32 %v288_v55, %v289_v54 }
 0x303   :  { %v291_v57 = vmax.f32 %v290_v56, 0.0 }
 0x305   :  { %v293_v58 = vadd.f32 1e-05, %v291_v57 }
 0x307   :  { %546 = vrsqrt.f32 %v293_v58 }
 0x314   :  { %v547_v60 = vpop.eup %546 }
 0x315   :  { %v295_v61 = vmul.f32 %v547_v60, %v292_v59 }
 0x317   :  { %v296_v62 = vpack.c.bf16 %v295_v61, %v295_v61 }
 0x319   :  { %514 = vmatmul.mubr.bf16.vlgmr.msra.gmra.mxu0 %v296_v62 }
 0x3d9   :  { %v402_v0 = vpop.f32.mrf.mxu0 }
 0x3da   :  { %v403_v1 = vadd.f32 %v439_v63, %v402_v0 }
 0x3db   :  { %v515_v2 = vpop.f32.mrf.mxu0 }
 0x3dc   :  { %408 = vst [vmem:[#allocation10] sm:$0xff] %v403_v1 }
 0x3dd   :  { %v405_v3 = vpop.f32.mrf.mxu0 }
 0x3de   :  { %639 = shalt.err (!%p636_p10)
}
 0x3df   :  { %418 = dma.vmem_to_hbm [thread:$0]  %s416_s24, 128, %s766_s7, [#allocation4]   ;;  %v516_v4 = vpop.f32.mrf.mxu0 }
 0x3e0   :  { %654 = dma.done.wait [#allocation4], 128  }
 0x3e1   :  { %655 = vsyncadd [#allocation4], 4294967168 }
 0x3e2   :  { %422 = vsyncpa [#allocation3], 1 }
 0x3e3   :  { %423 = vsyncpa [#allocation6], 1 }
 0x3e4   :  { %424 = vsyncpa [#allocation9], 1 }
 0x3e5   :  { %425 = vsyncpa [#allocation4], 1 }

</bundles_post_ra>
